<compile_context>
chip_gen: v5e
topology: v5e:2x2
jax: 0.10.0
libtpu: 0.0.40
codegen_flags: <defaults>
</compile_context>

<pallas_src>
import jax
import jax.numpy as jnp
from jax.experimental import pallas as pl
from jax.experimental.pallas import tpu as pltpu


def _gather_channels_kernel(idx_ref, x_ref, o_ref):
    # idx_ref: SMEM i32[K] (scalar prefetch) -- consumed by the index_maps only.
    # x_ref / o_ref: VMEM tiles of one (possibly reshaped) channel plane.
    o_ref[...] = x_ref[...]


def _pick_row_tile(R, max_rows):
    """Largest row-tile for an (R, 128) plane view.

    Must either equal R (full dim) or be a multiple of 8 dividing R, per the
    TPU (8, 128) block constraint.  Capped at `max_rows` to bound VMEM use.
    """
    if R <= max_rows:
        return R
    start = max_rows - (max_rows % 8)
    for d in range(start, 7, -8):
        if R % d == 0:
            return d
    return R  # no clean tile (rare); move the whole plane per step


def select_channels(image, indexes):
    """image: [C, H, W]; indexes: static python list of channel ids.

    Returns image[indexes, :, :] of shape [K, H, W].
    """
    C, H, W = image.shape
    K = len(indexes)
    HW = H * W
    idx = jnp.asarray(indexes, jnp.int32)

    if HW % 128 == 0:
        # Lane-dense view: each channel plane becomes (R, 128) so every vreg
        # row uses all 128 lanes and stores are unmasked.
        R = HW // 128
        itemsize = jnp.dtype(image.dtype).itemsize
        max_rows = max(8, (2 << 20) // (128 * itemsize))  # ~2 MiB per block
        tr = _pick_row_tile(R, max_rows)
        x_view = image.reshape(C, R, 128)
        out_shape = jax.ShapeDtypeStruct((K, R, 128), image.dtype)
        grid = (K, R // tr)
        in_specs = [pl.BlockSpec((1, tr, 128),
                                 lambda i, j, idx_ref: (idx_ref[i], j, 0))]
        out_specs = pl.BlockSpec((1, tr, 128),
                                 lambda i, j, idx_ref: (i, j, 0))
        dim_sem = ("parallel", "parallel")
    else:
        # Fallback: whole (H, W) plane per block (correct; lane-sparse if W<128).
        x_view = image
        out_shape = jax.ShapeDtypeStruct((K, H, W), image.dtype)
        grid = (K,)
        in_specs = [pl.BlockSpec((1, H, W),
                                 lambda i, idx_ref: (idx_ref[i], 0, 0))]
        out_specs = pl.BlockSpec((1, H, W),
                                 lambda i, idx_ref: (i, 0, 0))
        dim_sem = ("parallel",)

    out = pl.pallas_call(
        _gather_channels_kernel,
        out_shape=out_shape,
        grid_spec=pltpu.PrefetchScalarGridSpec(
            num_scalar_prefetch=1,
            grid=grid,
            in_specs=in_specs,
            out_specs=out_specs,
        ),
        compiler_params=pltpu.CompilerParams(
            dimension_semantics=dim_sem),
    )(idx, x_view)

    return out.reshape(K, H, W)


class GetModality:
    """JAX/Pallas port of sentinel2.transforms.GetModality."""

    def __init__(self, modality, dataset):
        self.modality = modality
        if dataset.lower() == 'bigearthnet':
            self.s2_indexes = [1, 2, 3, 4, 5, 6, 7, 8, 10, 11]
            self.rgb_indexes = [3, 2, 1]
        elif dataset.lower() == 'eurosat':
            self.s2_indexes = [1, 2, 3, 4, 5, 6, 7, 8, 11, 12]
            self.rgb_indexes = [3, 2, 1]
        else:
            raise NotImplementedError

    def __call__(self, inputs):
        if self.modality.lower() == 'rgb':
            inputs['image'] = select_channels(inputs['image'], self.rgb_indexes)
        elif self.modality.lower() == 's2':
            inputs['image'] = select_channels(inputs['image'], self.s2_indexes)
        # TODO(synk): in the real pipeline this gather could be fused with the
        # following dtype cast / normalize pass to halve HBM traffic.
        return inputs


if __name__ == "__main__":
    key = jax.random.PRNGKey(0)
    ok = True

    # EuroSAT Sentinel-2 image: 13 bands, small 16x16 spatial patch, CHW layout.
    # (H*W = 256 -> lane-dense path.)
    C, H, W = 13, 16, 16
    image = jax.random.uniform(key, (C, H, W), jnp.float32,
                               minval=0.0, maxval=4000.0)
    for modality in ('s2', 'rgb'):
        tr = GetModality(modality=modality, dataset='eurosat')
        out = tr({'image': image})['image']
        out = jax.block_until_ready(out)
        idxs = tr.s2_indexes if modality == 's2' else tr.rgb_indexes
        ref = image[jnp.asarray(idxs, jnp.int32)]
        ok &= out.shape == (len(idxs), H, W)
        ok &= bool(jnp.array_equal(out, ref))

    # BigEarthNet-style image with an odd spatial size (H*W = 225, not a
    # multiple of 128) to exercise the lane-sparse fallback path.
    C2, H2, W2 = 12, 15, 15
    image2 = jax.random.uniform(jax.random.PRNGKey(1), (C2, H2, W2),
                                jnp.float32, minval=0.0, maxval=4000.0)
    for modality in ('s2', 'rgb'):
        tr = GetModality(modality=modality, dataset='bigearthnet')
        out = tr({'image': image2})['image']
        out = jax.block_until_ready(out)
        idxs = tr.s2_indexes if modality == 's2' else tr.rgb_indexes
        ref = image2[jnp.asarray(idxs, jnp.int32)]
        ok &= out.shape == (len(idxs), H2, W2)
        ok &= bool(jnp.array_equal(out, ref))

    assert ok, "mismatch vs reference"
    print("KERNEL_OK")
</pallas_src>

<mosaic_0001>
module attributes {stable_mosaic.version = 11 : i64} {
  func.func @_gather_channels_kernel(%arg0: i32, %arg1: i32, %arg2: memref<10xi32, #tpu.memory_space<smem>>, %arg3: memref<1x2x128xf32, #tpu.memory_space<vmem>>, %arg4: memref<1x2x128xf32, #tpu.memory_space<vmem>>) attributes {dimension_semantics = [#tpu.dimension_semantics<parallel>, #tpu.dimension_semantics<parallel>], iteration_bounds = array<i64: 10, 1>, scalar_prefetch = 1 : i64, scratch_operands = 0 : i64, tpu.core_type = #tpu.core_type<tc>, window_params = [{transform_indices = @transform_0, window_bounds = array<i64: 1, 2, 128>}, {transform_indices = @transform_1, window_bounds = array<i64: 1, 2, 128>}]} {
    %c0 = arith.constant 0 : index
    %c0_0 = arith.constant 0 : index
    %c0_1 = arith.constant 0 : index
    %0 = vector.load %arg3[%c0, %c0_0, %c0_1] : memref<1x2x128xf32, #tpu.memory_space<vmem>>, vector<1x2x128xf32>
    %c0_2 = arith.constant 0 : index
    %c0_3 = arith.constant 0 : index
    %c0_4 = arith.constant 0 : index
    %1 = vector.load %arg4[%c0_2, %c0_3, %c0_4] : memref<1x2x128xf32, #tpu.memory_space<vmem>>, vector<1x2x128xf32>
    tpu.vector_store %arg4[%c0_2, %c0_3, %c0_4], %0 {strides = array<i32>} : memref<1x2x128xf32, #tpu.memory_space<vmem>>, vector<1x2x128xf32>,
    return
  }
  func.func @transform_0(%arg0: i32, %arg1: i32, %arg2: memref<10xi32, #tpu.memory_space<smem>>) -> (i32, i32, i32) {
    %0 = arith.index_cast %arg0 : i32 to index
    %1 = memref.load %arg2[%0] : memref<10xi32, #tpu.memory_space<smem>>
    %c0_i32 = arith.constant 0 : i32
    %c0_i32_0 = arith.constant 0 : i32
    return %1, %arg1, %c0_i32 : i32, i32, i32
  }
  func.func @transform_1(%arg0: i32, %arg1: i32, %arg2: memref<10xi32, #tpu.memory_space<smem>>) -> (i32, i32, i32) {
    %c0_i32 = arith.constant 0 : i32
    %c0_i32_0 = arith.constant 0 : i32
    return %arg0, %arg1, %c0_i32 : i32, i32, i32
  }
}

</mosaic_0001>

<bundles_post_ra>
// kernel: tpu_custom_call.1
= control target key start
LH: loop header
LB: loop body
LE: loop exit
PB: predicated region body
PF: predicated region fallthrough
CT: control target
= control target key end

     0   :  { %s519_s12 = smov [#allocation3]   ;;  %s707_s0 = inlined_call_operand.hbm [shape: s32[10], index: 0, kind: input, shape index: {}]   ;;  %s708_s1 = inlined_call_operand.hbm [shape: f32[13,2,128], index: 1, kind: input, shape index: {}]   ;;  %s709_s2 = inlined_call_operand.hbm [shape: f32[10,2,128], index: 2, kind: output, shape index: {}]  }
   0x1   :  { %s8_s11 = sshll.u32 %s707_s0, 4  ;;  %s9_s11 = int_to_ptr.hbm [resolvable:$true] %s8_s11 }
   0x2   :  { %11 = dma.hbm_to_smem %s9_s11, 16, %s519_s12, [#allocation2] }
   0x3   :  { %473 = dma.done.wait [#allocation2], 16 }
   0x4   :  { %474 = vsyncadd [#allocation2], 4294967280 }
   0x5   :  { %14 = sfence }
   0x6   :  { %15 = vsyncpa [#allocation5], 0 }
   0x7   :  { %17 = vsyncpa [#allocation5 + $0x1], 0 }
   0x8   :  { %18 = vsyncpa [#allocation6], 0 }
   0x9   :  { %20 = vsyncpa [#allocation6 + $0x1], 0  ;;  %s538_s13 = smov 0   ;;  %s540_s14 = smov 0  }
   0xa   :  { %s542_s15 = smov 0   ;;  %s544_s16 = smov 0  }
   0xb   :  { %s546_s17 = smov 0   ;;  %s548_s0 = smov 0  }
   0xc   :  { %s550_s18 = smov 0   ;;  %s552_s19 = smov 0  }
   0xd   :  { %s554_s20 = smov 0  }
   0xe LB: > { %712 = sst [smem:[#allocation13_spill]] %s513_s19  ;;  %s263_s21 = sadd.s32 4294967295, %s517_s20   ;;  %s517_s20 = sphi %s554_s20, %s26_s20   ;;  %s513_s19 = sphi %s552_s19, %s721_s19   ;;  %s509_s18 = sphi %s550_s18, %s720_s18   ;;  %s505_s0 = sphi %s548_s0, %s727_s0   ;;  %s501_s17 = sphi %s546_s17, %s726_s17   ;;  %s497_s16 = sphi %s544_s16, %s725_s16   ;;  %s493_s15 = sphi %s542_s15, %s724_s15   ;;  %s489_s14 = sphi %s540_s14, %s723_s14   ;;  %s485_s13 = sphi %s538_s13, %s722_s13  }
   0xf   : > { %s264_s22 = sadd.s32 4294967294, %s517_s20   ;;  %s38_s23 = sadd.s32 1, %s513_s19 }
  0x10   : > { %s42_s24 = sld [smem:[#allocation3 + %s513_s19]]  ;;  %p40_p0 = scmp.ge.s32.totalorder %s38_s23, 10 }
  0x11   : > { %s49_s25 = sadd.s32 1, %s505_s0  ;;  %p56_p1 = scmp.ne.s32.totalorder %s505_s0, %s501_s17 }
  0x12   : > { %p57_p2 = scmp.eq.s32.totalorder %s517_s20, 0  ;;  %s729_s23 = smov (%p40_p0, %s38_s23), 0 }
  0x13   : > { %713 = sst [smem:[#allocation14_spill]] %s729_s23  ;;  %p62_p4 = scmp.ne.s32.totalorder %s501_s17, %s497_s16 }
  0x14   : > { %p591_p3 = por %p57_p2, %p56_p1  ;;  %s43_s27 = sld [smem:[#allocation3 + %s729_s23]] }
  0x15   : > { %p63_p5 = scmp.eq.s32.totalorder %s263_s21, 0  ;;  %s72_s28 = ssub.s32 %s513_s19, %s729_s23 }
  0x16   : > { %s77_s29 = sadd.s32 1, %s493_s15  ;;  %p75_p7 = scmp.eq.s32.totalorder %s72_s28, 0 }
  0x17   : > { %p600_p6 = por %p63_p5, %p62_p4  ;;  %p87_p8 = scmp.ne.s32.totalorder %s493_s15, %s489_s14 }
  0x18   : > { %p88_p9 = scmp.eq.s32.totalorder %s263_s21, 9  ;;  %p93_p11 = scmp.ne.s32.totalorder %s489_s14, %s485_s13 }
  0x19   : > { %s607_s3 = scalar_select %p75_p7, %s493_s15, %s77_s29  }
  0x1a   : > { %p609_p10 = por %p88_p9, %p87_p8  ;;  %s44_s5 = ssub.s32 %s42_s24, %s43_s27 }
  0x1b   : > { %p94_p12 = scmp.eq.s32.totalorder %s264_s22, 9  ;;  %p47_p13 = scmp.eq.s32.totalorder %s44_s5, 0 }
  0x1c   : > { %p292_p1 = scmp.lt.s32.totalorder %s517_s20, 10  ;;  %s114_s8 = sand.u32 1, %s505_s0  }
  0x1d   : > { %p615_p0 = por %p94_p12, %p93_p11  ;;  %s267_s10 = sshll.u32 %s114_s8, 1 }
  0x1e   : > { %s621_s7 = scalar_select %p47_p13, %s505_s0, %s49_s25  }
  0x1f   : > { %p626_p2 = pnand %p292_p1, %p591_p3  ;;  %p269_p4 = scmp.ge.s32.totalorder %s517_s20, 1 }
  0x20   : > { %s276_s11 = scalar_select %p591_p3, [#allocation3], [#allocation8] }
  0x21   : > { %s277_s12 = scalar_select %p591_p3, %s513_s19, 0 }
  0x22   : > { %s731_s11 = smov (!%p292_p1, %s276_s11), [#allocation9]  ;;  %p133_p5 = scmp.lt.s32.totalorder %s517_s20, 11 }
  0x23   : > { %s733_s12 = smov (!%p292_p1, %s277_s12), 0  ;;  %s118_s22 = scalar_lea.vmem [#allocation4], %s267_s10 }
  0x24   : > { %s119_s16 = sld [smem:[%s731_s11 + %s733_s12]]  ;;  %p637_p7 = pnand %p269_p4, %p133_p5 }
  0x25   : > { %s128_s24 = sshll.u32 %s118_s22, 4  ;;  %s115_s5 = scalar_lea.sflag [#allocation5], %s114_s8  ;;  %s129_s24 = int_to_ptr.vmem [resolvable:$true] %s128_s24 }
  0x26   : > { %p383_p8 = pneg %p626_p2  ;;  %s386_s12 = scalar_lea.hbm %s708_s1, 26 }
  0x2a   : > { %s268_s25 = sshll.u32 %s119_s16, 1 }
  0x2b   : > { %s124_s29 = scalar_lea.hbm %s708_s1, %s268_s25 }
  0x2c   : > { %s126_s26 = sshll.u32 %s124_s29, 4  ;;  %s127_s26 = int_to_ptr.hbm [resolvable:$true] %s126_s26 }
  0x2d   : > { %s379_s23 = sshra.s32 %s127_s26, 4  ;;  %s380_s23 = int_to_ptr.hbm [resolvable:$true] %s379_s23 }
  0x2e   : > { %s381_s19 = scalar_lea.hbm %s380_s23, 2  ;;  %p387_p12 = scmp.lt.s32.totalorder %s380_s23, %s708_s1 }
  0x2f   : > { %p382_p3 = scmp.ne.s32.totalorder %s380_s23, %s381_s19  ;;  %p388_p13 = scmp.lt.s32.totalorder %s386_s12, %s381_s19 }
  0x31   : > { %p384_p9 = pnand %p383_p8, %p382_p3  ;;  %p389_p1 = por %p388_p13, %p387_p12 }
  0x33   : > { %p385_p11 = pneg %p384_p9 }
  0x35   : > { %p390_p4 = pnand %p389_p1, %p385_p11 }
  0x37   : > { %393 = shalt.err (!%p390_p4)
}
  0x38   : > { %287 = dma.hbm_to_vmem [thread:$0]  (!%p626_p2), %s127_s26, 32, %s129_s24, %s115_s5  }
  0x39   : > { %137 = sbr.rel (%p637_p7) target bundleno = 79 (0x4f), region = 24  ;;  %s139_s8 = sand.u32 (!%p637_p7), 1, %s501_s17  }
  0x3a   : > { %s270_s25 = sshll.u32 (!%p637_p7), %s139_s8, 1  ;;  %s140_s27 = scalar_lea.sflag (!%p637_p7), [#allocation5], %s139_s8 }
  0x3b   : > { %s143_s28 = scalar_lea.vmem (!%p637_p7), [#allocation4], %s270_s25 }
  0x3e   : > { %476 = dma.done.wait (%p600_p6), %s140_s27, 32  }
  0x3f   : > { %478 = vsyncadd (%p600_p6), %s140_s27, 4294967264  ;;  %s160_s19 = sand.u32 1, %s489_s14   ;;  %s273_s23 = sshll.u32 %s509_s18, 1  ;;  %v164_v0 = vld [vmem:[%s143_s28] sm:$0x3] }
  0x40   : > { %s271_s9 = sshll.u32 %s160_s19, 1  ;;  %s178_s29 = scalar_lea.hbm %s709_s2, %s273_s23 }
  0x41   : > { %s162_s26 = scalar_lea.vmem [#allocation7], %s271_s9  ;;  %s182_s11 = sshll.u32 %s178_s29, 4  ;;  %s183_s11 = int_to_ptr.hbm [resolvable:$true] %s182_s11 }
  0x42   : > { %s180_s5 = sshll.u32 %s162_s26, 4  ;;  %165 = vst [vmem:[%s162_s26] sm:$0x3] %v164_v0  ;;  %s167_s10 = scalar_lea.sflag [#allocation6], %s160_s19  ;;  %s181_s5 = int_to_ptr.vmem [resolvable:$true] %s180_s5 }
  0x43   : > { %s423_s30 = sshra.s32 %s183_s11, 4  ;;  %s429_s22 = scalar_lea.hbm %s709_s2, 20  ;;  %s424_s30 = int_to_ptr.hbm [resolvable:$true] %s423_s30 }
  0x44   : > { %s425_s12 = scalar_lea.hbm %s424_s30, 2  ;;  %p430_p7 = scmp.lt.s32.totalorder %s424_s30, %s709_s2 }
  0x45   : > { %p426_p6 = scmp.ne.s32.totalorder %s424_s30, %s425_s12  ;;  %p431_p3 = scmp.lt.s32.totalorder %s429_s22, %s425_s12 }
  0x47   : > { %p427_p2 = pnand %p426_p6, %p609_p10  ;;  %p432_p8 = por %p431_p3, %p430_p7 }
  0x49   : > { %p428_p5 = pneg %p427_p2 }
  0x4b   : > { %p433_p9 = pnand %p432_p8, %p428_p5 }
  0x4d   : > { %436 = shalt.err (!%p433_p9)
}
  0x4e   : > { %280 = dma.vmem_to_hbm [thread:$0]  (%p609_p10), %s181_s5, 32, %s183_s11, %s167_s10  }
  0x4f PF: > { %p293_p11 = scmp.ge.s32.totalorder %s517_s20, 2  ;;  %s194_s27 = sand.u32 1, %s485_s13  }
  0x50   : > { %s195_s28 = scalar_lea.sflag [#allocation6], %s194_s27 }
  0x51   : > { %p289_p12 = pnand %p293_p11, %p615_p0 }
  0x53   : > { %p290_p13 = pneg %p289_p12 }
  0x55   : > { %480 = dma.done.wait (%p290_p13), %s195_s28, 32  }
  0x56   : > { %482 = vsyncadd (%p290_p13), %s195_s28, 4294967264  ;;  %s26_s20 = sadd.s32 1, %s517_s20   ;;  %s720_s18 = sld [smem:[#allocation13_spill]] }
  0x57   : > { %p23_p1 = scmp.ge.s32.totalorder %s26_s20, 12   ;;  %s721_s19 = sld [smem:[#allocation14_spill]] }
  0x58   : > { %s722_s13 = smov %s489_s14  ;;  %s723_s14 = smov %s493_s15 }
  0x59   : > { %s724_s15 = smov %s607_s3  ;;  %s725_s16 = smov %s501_s17 }
  0x5a   : > { %s726_s17 = smov %s505_s0  ;;  %s727_s0 = smov %s621_s7 }
  0x5b   :  { %25 = sbr.rel (!%p23_p1) target bundleno = 14 (0xe), region = 69 }
  0x60   :  { %201 = vsyncpa [#allocation5], 1 }
  0x61   :  { %203 = vsyncpa [#allocation5 + $0x1], 1 }
  0x62   :  { %204 = vsyncpa [#allocation6], 1 }
  0x63   :  { %206 = vsyncpa [#allocation6 + $0x1], 1 }

</bundles_post_ra>
